<compile_context>
chip_gen: v6e
topology: v6e:2x2x1
jax: 0.10.0
libtpu: 0.0.40
codegen_flags: <defaults>
</compile_context>

<pallas_src>
import functools

import jax
import jax.numpy as jnp
from jax import lax
from jax.experimental import pallas as pl
from jax.experimental.pallas import tpu as pltpu


# ----------------------------------------------------------------------------
# One-time capability probes (tiny eager kernels, cached for the process).
# ----------------------------------------------------------------------------

@functools.lru_cache(maxsize=1)
def _roll_mode():
    """How pltpu.roll shifts data: 'numpy' (np.roll convention), 'inverse',
    or 'concat' (slice+concat fallback if roll is unavailable)."""
    def kern(x_ref, o_ref):
        o_ref[...] = pltpu.roll(x_ref[...], 1, axis=1)
    try:
        x = jnp.broadcast_to(jnp.arange(128, dtype=jnp.float32)[None, :], (8, 128))
        out = pl.pallas_call(
            kern, out_shape=jax.ShapeDtypeStruct((8, 128), jnp.float32))(x)
        first = float(jax.device_get(out)[0, 0])
        if first == 127.0:   # out[:, f] = x[:, (f - shift) % n]   (np.roll)
            return "numpy"
        if first == 1.0:     # out[:, f] = x[:, (f + shift) % n]
            return "inverse"
    except Exception:
        pass
    return "concat"


@functools.lru_cache(maxsize=1)
def _mask_dtype_name():
    """'bool' if Mosaic accepts a bool-typed output block, else 'int8'."""
    def kern(x_ref, o_ref):
        o_ref[...] = x_ref[...] < 1.0
    try:
        out = pl.pallas_call(
            kern, out_shape=jax.ShapeDtypeStruct((8, 128), jnp.bool_)
        )(jnp.zeros((8, 128), jnp.float32))
        jax.block_until_ready(out)
        return "bool"
    except Exception:
        return "int8"


def _make_shift(hw, mode):
    """Returns shift(v, k) implementing out[:, f] = v[:, (f + k) % hw]."""
    if mode == "numpy":
        return lambda v, k: pltpu.roll(v, (-k) % hw, axis=1)
    if mode == "inverse":
        return lambda v, k: pltpu.roll(v, k % hw, axis=1)

    def concat_shift(v, k):          # proven fallback (materializes copies)
        k = k % hw
        if k == 0:
            return v
        return jnp.concatenate([v[:, k:], v[:, :k]], axis=1)
    return concat_shift


# ----------------------------------------------------------------------------
# Kernel
# ----------------------------------------------------------------------------

def _grad_mask_kernel(edge_ref, x_ref, o_ref, *, W, HW, roll_mode):
    # edge_ref: (4, HW) f32 border masks:
    #   [0] not-first-row, [1] not-last-row, [2] not-first-col, [3] not-last-col
    # x_ref:   (B, HW) flattened images (native dtype)
    # o_ref:   (B, HW) bool / int8 mask (true where gradient magnitude < 1)
    shift = _make_shift(HW, roll_mode)

    x = x_ref[...].astype(jnp.float32)
    e = edge_ref[...]

    # Row neighbours; masks reproduce conv2d's zero padding at top/bottom.
    nxt = shift(x, W) * e[1:2, :]     # x[i+1, j]   (zero beyond last row)
    prv = shift(x, -W) * e[0:1, :]    # x[i-1, j]   (zero beyond first row)

    # Separable Scharr: vertical smooth [3,10,3]^T and vertical difference.
    s = 3.0 * (nxt + prv) + 10.0 * x
    d = nxt - prv

    # Column border masks, broadcast once and reused by both gx and gy.
    m_nfc = jnp.broadcast_to(e[2:3, :], x.shape)   # zero on col 0
    m_nlc = jnp.broadcast_to(e[3:4, :], x.shape)   # zero on col W-1

    # gx = S[i, j+1] - S[i, j-1]        (horizontal [-1, 0, 1] on S)
    gx = shift(s, 1) * m_nlc - shift(s, -1) * m_nfc
    # gy = 3*D[i, j-1] + 10*D[i, j] + 3*D[i, j+1]
    gy = 3.0 * (shift(d, 1) * m_nlc + shift(d, -1) * m_nfc) + 10.0 * d

    g2 = gx * gx + gy * gy             # sqrt(g2) < 1  <=>  g2 < 1
    o_ref[...] = (g2 < 1.0).astype(o_ref.dtype)


# ----------------------------------------------------------------------------
# Wrapper
# ----------------------------------------------------------------------------

@functools.partial(jax.jit, static_argnames=("roll_mode", "out_dtype_name"))
def _grad_generation_impl(x, *, roll_mode, out_dtype_name):
    N, C, H, W = x.shape
    HW = H * W
    out_dtype = jnp.dtype(out_dtype_name)

    # Layout-preserving reshape (no copy); input stays in its native dtype.
    x_flat = x.reshape(N, HW)

    # Border masks for the in-kernel halo (tiny, resident across grid steps).
    row = lax.broadcasted_iota(jnp.int32, (H, W), 0).reshape(1, HW)
    col = lax.broadcasted_iota(jnp.int32, (H, W), 1).reshape(1, HW)
    edge = jnp.concatenate(
        [(row > 0), (row < H - 1), (col > 0), (col < W - 1)], axis=0
    ).astype(jnp.float32)                                   # (4, HW)

    # --- batch-block sizing ---------------------------------------------
    # Target ~2 MiB of f32 image data per grid step: amortizes the ~0.35us
    # per-step overhead on v5e/v6e while staying <= ~2 MiB per step for v7x.
    f32_img = HW * 4
    n_cap = max(1, (2 << 20) // f32_img)
    if n_cap >= N:
        b_blk = N
        # Whole batch would be one big block: split so the "parallel" batch
        # axis has >= 2 grid steps (v7x has two TensorCores).
        if N >= 64 and N * f32_img >= (1 << 20):
            b_blk = max(32, (pl.cdiv(N, 2) // 32) * 32)
    elif n_cap >= 32:
        b_blk = (n_cap // 32) * 32     # 1-byte output tile is (32, 128)
    elif n_cap >= 8:
        b_blk = (n_cap // 8) * 8
    else:
        # TODO(synk): very large single images should be tiled spatially with
        # a halo exchange; here we just keep the sublane dim a multiple of 8.
        b_blk = min(N, 8)
    grid = (pl.cdiv(N, b_blk),)

    in_bytes = jnp.dtype(x.dtype).itemsize
    blk_f32 = b_blk * HW * 4
    # 2x double-buffered input + 2x output + ~8 live f32 block intermediates.
    vmem_est = b_blk * HW * (2 * in_bytes + 2) + 8 * blk_f32 + 4 * HW * 4
    vmem_limit = int(min(64 << 20, max(16 << 20, (vmem_est * 5) // 4)))

    mask = pl.pallas_call(
        functools.partial(_grad_mask_kernel, W=W, HW=HW, roll_mode=roll_mode),
        out_shape=jax.ShapeDtypeStruct((N, HW), out_dtype),
        grid=grid,
        in_specs=[
            pl.BlockSpec((4, HW), lambda n: (0, 0)),       # border masks (resident)
            pl.BlockSpec((b_blk, HW), lambda n: (n, 0)),   # images
        ],
        out_specs=pl.BlockSpec((b_blk, HW), lambda n: (n, 0)),
        compiler_params=pltpu.CompilerParams(
            dimension_semantics=("parallel",),
            vmem_limit_bytes=vmem_limit),
        cost_estimate=pl.CostEstimate(
            flops=21 * N * HW,
            transcendentals=0,
            bytes_accessed=N * HW * (in_bytes + 1) + 4 * HW * 4),
    )(edge, x_flat)

    if mask.dtype != jnp.bool_:
        mask = mask.astype(jnp.bool_)   # int8 fallback path only
    return mask.reshape(N, 1, H, W)


def grad_generation(x):
    """x: (N, 1, H, W) -> bool mask (N, 1, H, W), matching the torch module:
    sqrt(conv(x, Kx)^2 + conv(x, Ky)^2) < 1 with zero padding=1."""
    N, C, H, W = x.shape
    assert C == 1, "grad_generation expects a single-channel input (kernel is [1,1,3,3])"
    return _grad_generation_impl(
        x, roll_mode=_roll_mode(), out_dtype_name=_mask_dtype_name())


if __name__ == "__main__":
    key = jax.random.PRNGKey(0)
    # Module requires a single channel (conv weight is [1, 1, 3, 3]).
    x = jax.random.normal(key, (2, 1, 16, 16), dtype=jnp.float32)

    out = grad_generation(x)
    jax.block_until_ready(out)

    assert out.shape == (2, 1, 16, 16)
    assert out.dtype == jnp.bool_

    # Pure-JAX reference (PyTorch conv2d == cross-correlation, zero padding=1);
    # tolerant only at pixels whose gradient magnitude sits on the threshold.
    xk = jnp.array([[-3., 0., 3.], [-10., 0., 10.], [-3., 0., 3.]], jnp.float32)
    yk = jnp.array([[-3., -10., -3.], [0., 0., 0.], [3., 10., 3.]], jnp.float32)
    dn = ("NCHW", "OIHW", "NCHW")
    gx_r = lax.conv_general_dilated(x, xk[None, None], (1, 1), "SAME",
                                    dimension_numbers=dn)
    gy_r = lax.conv_general_dilated(x, yk[None, None], (1, 1), "SAME",
                                    dimension_numbers=dn)
    g_ref = jnp.sqrt(gx_r * gx_r + gy_r * gy_r)
    ref_mask = g_ref < 1.0
    mismatch = (out != ref_mask) & (jnp.abs(g_ref - 1.0) > 1e-3)
    assert not bool(jnp.any(mismatch)), "kernel mask disagrees with reference"

    print("KERNEL_OK")
</pallas_src>

<mosaic_0001>
module attributes {stable_mosaic.version = 11 : i64} {
  func.func @kern(%arg0: memref<8x128xf32, #tpu.memory_space<vmem>>, %arg1: memref<8x128xf32, #tpu.memory_space<vmem>>) attributes {dimension_semantics = [], scalar_prefetch = 0 : i64, scratch_operands = 0 : i64, tpu.core_type = #tpu.core_type<tc>} {
    %c0 = arith.constant 0 : index
    %c0_0 = arith.constant 0 : index
    %0 = vector.load %arg0[%c0, %c0_0] : memref<8x128xf32, #tpu.memory_space<vmem>>, vector<8x128xf32>
    %c1_i32 = arith.constant 1 : i32
    %1 = tpu.dynamic_rotate %0 by %c1_i32 dim 1 : vector<8x128xf32>, i32 -> vector<8x128xf32>
    %c0_1 = arith.constant 0 : index
    %c0_2 = arith.constant 0 : index
    %2 = vector.load %arg1[%c0_1, %c0_2] : memref<8x128xf32, #tpu.memory_space<vmem>>, vector<8x128xf32>
    tpu.vector_store %arg1[%c0_1, %c0_2], %1 {strides = array<i32>} : memref<8x128xf32, #tpu.memory_space<vmem>>, vector<8x128xf32>,
    return
  }
}

module attributes {stable_mosaic.version = 11 : i64} {
  func.func @kern(%arg0: memref<8x128xf32, #tpu.memory_space<vmem>>, %arg1: memref<8x128xi32, #tpu.memory_space<vmem>>) attributes {dimension_semantics = [], scalar_prefetch = 0 : i64, scratch_operands = 0 : i64, tpu.core_type = #tpu.core_type<tc>} {
    %c0 = arith.constant 0 : index
    %c0_0 = arith.constant 0 : index
    %0 = vector.load %arg0[%c0, %c0_0] : memref<8x128xf32, #tpu.memory_space<vmem>>, vector<8x128xf32>
    %cst = arith.constant 1.000000e+00 : f32
    %1 = vector.broadcast %cst : f32 to vector<8x128xf32>
    %2 = arith.cmpf olt, %0, %1 : vector<8x128xf32>
    %c0_1 = arith.constant 0 : index
    %c0_2 = arith.constant 0 : index
    %3 = vector.load %arg1[%c0_1, %c0_2] : memref<8x128xi32, #tpu.memory_space<vmem>>, vector<8x128xi32>
    %4 = arith.extui %2 : vector<8x128xi1> to vector<8x128xi32>
    %cst_3 = arith.constant dense<0> : vector<8x128xi32>
    %5 = arith.cmpi ne, %3, %cst_3 : vector<8x128xi32>
    tpu.vector_store %arg1[%c0_1, %c0_2], %4 {strides = array<i32>} : memref<8x128xi32, #tpu.memory_space<vmem>>, vector<8x128xi32>,
    return
  }
}

module attributes {stable_mosaic.version = 11 : i64} {
  func.func @_grad_mask_kernel(%arg0: i32, %arg1: memref<4x256xf32, #tpu.memory_space<vmem>>, %arg2: memref<2x256xf32, #tpu.memory_space<vmem>>, %arg3: memref<2x256xi8, #tpu.memory_space<vmem>>) attributes {dimension_semantics = [#tpu.dimension_semantics<parallel>], iteration_bounds = array<i64: 1>, scalar_prefetch = 0 : i64, scratch_operands = 0 : i64, tpu.core_type = #tpu.core_type<tc>, window_params = [{pipeline_mode = #tpu.pipeline_mode<synchronous>, transform_indices = @transform_0, window_bounds = array<i64: 4, 256>}, {transform_indices = @transform_1, window_bounds = array<i64: 2, 256>}, {transform_indices = @transform_2, window_bounds = array<i64: 2, 256>}]} {
    %c0 = arith.constant 0 : index
    %c0_0 = arith.constant 0 : index
    %0 = vector.load %arg2[%c0, %c0_0] : memref<2x256xf32, #tpu.memory_space<vmem>>, vector<2x256xf32>
    %c0_1 = arith.constant 0 : index
    %c0_2 = arith.constant 0 : index
    %1 = vector.load %arg1[%c0_1, %c0_2] : memref<4x256xf32, #tpu.memory_space<vmem>>, vector<4x256xf32>
    %2 = vector.extract_strided_slice %0 {offsets = [0, 16], sizes = [2, 240], strides = [1, 1]} : vector<2x256xf32> to vector<2x240xf32>
    %3 = vector.extract_strided_slice %0 {offsets = [0, 0], sizes = [2, 16], strides = [1, 1]} : vector<2x256xf32> to vector<2x16xf32>
    %4 = tpu.concatenate %2, %3 in 1 : vector<2x240xf32>, vector<2x16xf32> -> vector<2x256xf32>
    %5 = vector.extract_strided_slice %1 {offsets = [1, 0], sizes = [1, 256], strides = [1, 1]} : vector<4x256xf32> to vector<1x256xf32>
    %6 = vector.broadcast %5 : vector<1x256xf32> to vector<2x256xf32>
    %7 = arith.mulf %4, %6 : vector<2x256xf32>
    %8 = vector.extract_strided_slice %0 {offsets = [0, 240], sizes = [2, 16], strides = [1, 1]} : vector<2x256xf32> to vector<2x16xf32>
    %9 = vector.extract_strided_slice %0 {offsets = [0, 0], sizes = [2, 240], strides = [1, 1]} : vector<2x256xf32> to vector<2x240xf32>
    %10 = tpu.concatenate %8, %9 in 1 : vector<2x16xf32>, vector<2x240xf32> -> vector<2x256xf32>
    %11 = vector.extract_strided_slice %1 {offsets = [0, 0], sizes = [1, 256], strides = [1, 1]} : vector<4x256xf32> to vector<1x256xf32>
    %12 = vector.broadcast %11 : vector<1x256xf32> to vector<2x256xf32>
    %13 = arith.mulf %10, %12 : vector<2x256xf32>
    %14 = arith.addf %7, %13 : vector<2x256xf32>
    %cst = arith.constant 3.000000e+00 : f32
    %15 = vector.broadcast %cst : f32 to vector<2x256xf32>
    %16 = arith.mulf %15, %14 : vector<2x256xf32>
    %cst_3 = arith.constant 1.000000e+01 : f32
    %17 = vector.broadcast %cst_3 : f32 to vector<2x256xf32>
    %18 = arith.mulf %17, %0 : vector<2x256xf32>
    %19 = arith.addf %16, %18 : vector<2x256xf32>
    %20 = arith.subf %7, %13 : vector<2x256xf32>
    %21 = vector.extract_strided_slice %1 {offsets = [2, 0], sizes = [1, 256], strides = [1, 1]} : vector<4x256xf32> to vector<1x256xf32>
    %22 = vector.shape_cast %21 : vector<1x256xf32> to vector<1x256xf32>
    %23 = vector.broadcast %22 : vector<1x256xf32> to vector<2x256xf32>
    %24 = vector.extract_strided_slice %1 {offsets = [3, 0], sizes = [1, 256], strides = [1, 1]} : vector<4x256xf32> to vector<1x256xf32>
    %25 = vector.shape_cast %24 : vector<1x256xf32> to vector<1x256xf32>
    %26 = vector.broadcast %25 : vector<1x256xf32> to vector<2x256xf32>
    %27 = vector.extract_strided_slice %19 {offsets = [0, 1], sizes = [2, 255], strides = [1, 1]} : vector<2x256xf32> to vector<2x255xf32>
    %28 = vector.extract_strided_slice %19 {offsets = [0, 0], sizes = [2, 1], strides = [1, 1]} : vector<2x256xf32> to vector<2x1xf32>
    %29 = tpu.concatenate %27, %28 in 1 : vector<2x255xf32>, vector<2x1xf32> -> vector<2x256xf32>
    %30 = arith.mulf %29, %26 : vector<2x256xf32>
    %31 = vector.extract_strided_slice %19 {offsets = [0, 255], sizes = [2, 1], strides = [1, 1]} : vector<2x256xf32> to vector<2x1xf32>
    %32 = vector.extract_strided_slice %19 {offsets = [0, 0], sizes = [2, 255], strides = [1, 1]} : vector<2x256xf32> to vector<2x255xf32>
    %33 = tpu.concatenate %31, %32 in 1 : vector<2x1xf32>, vector<2x255xf32> -> vector<2x256xf32>
    %34 = arith.mulf %33, %23 : vector<2x256xf32>
    %35 = arith.subf %30, %34 : vector<2x256xf32>
    %36 = vector.extract_strided_slice %20 {offsets = [0, 1], sizes = [2, 255], strides = [1, 1]} : vector<2x256xf32> to vector<2x255xf32>
    %37 = vector.extract_strided_slice %20 {offsets = [0, 0], sizes = [2, 1], strides = [1, 1]} : vector<2x256xf32> to vector<2x1xf32>
    %38 = tpu.concatenate %36, %37 in 1 : vector<2x255xf32>, vector<2x1xf32> -> vector<2x256xf32>
    %39 = arith.mulf %38, %26 : vector<2x256xf32>
    %40 = vector.extract_strided_slice %20 {offsets = [0, 255], sizes = [2, 1], strides = [1, 1]} : vector<2x256xf32> to vector<2x1xf32>
    %41 = vector.extract_strided_slice %20 {offsets = [0, 0], sizes = [2, 255], strides = [1, 1]} : vector<2x256xf32> to vector<2x255xf32>
    %42 = tpu.concatenate %40, %41 in 1 : vector<2x1xf32>, vector<2x255xf32> -> vector<2x256xf32>
    %43 = arith.mulf %42, %23 : vector<2x256xf32>
    %44 = arith.addf %39, %43 : vector<2x256xf32>
    %cst_4 = arith.constant 3.000000e+00 : f32
    %45 = vector.broadcast %cst_4 : f32 to vector<2x256xf32>
    %46 = arith.mulf %45, %44 : vector<2x256xf32>
    %cst_5 = arith.constant 1.000000e+01 : f32
    %47 = vector.broadcast %cst_5 : f32 to vector<2x256xf32>
    %48 = arith.mulf %47, %20 : vector<2x256xf32>
    %49 = arith.addf %46, %48 : vector<2x256xf32>
    %50 = arith.mulf %35, %35 : vector<2x256xf32>
    %51 = arith.mulf %49, %49 : vector<2x256xf32>
    %52 = arith.addf %50, %51 : vector<2x256xf32>
    %cst_6 = arith.constant 1.000000e+00 : f32
    %53 = vector.broadcast %cst_6 : f32 to vector<2x256xf32>
    %54 = arith.cmpf olt, %52, %53 : vector<2x256xf32>
    %55 = arith.extui %54 : vector<2x256xi1> to vector<2x256xi8>
    %c0_7 = arith.constant 0 : index
    %c0_8 = arith.constant 0 : index
    %56 = vector.load %arg3[%c0_7, %c0_8] : memref<2x256xi8, #tpu.memory_space<vmem>>, vector<2x256xi8>
    tpu.vector_store %arg3[%c0_7, %c0_8], %55 {strides = array<i32>} : memref<2x256xi8, #tpu.memory_space<vmem>>, vector<2x256xi8>,
    return
  }
  func.func @transform_0(%arg0: i32) -> (i32, i32) {
    %c0_i32 = arith.constant 0 : i32
    %c0_i32_0 = arith.constant 0 : i32
    %c0_i32_1 = arith.constant 0 : i32
    return %c0_i32, %c0_i32_0 : i32, i32
  }
  func.func @transform_1(%arg0: i32) -> (i32, i32) {
    %c0_i32 = arith.constant 0 : i32
    %c0_i32_0 = arith.constant 0 : i32
    return %arg0, %c0_i32 : i32, i32
  }
  func.func @transform_2(%arg0: i32) -> (i32, i32) {
    %c0_i32 = arith.constant 0 : i32
    %c0_i32_0 = arith.constant 0 : i32
    return %arg0, %c0_i32 : i32, i32
  }
}

</mosaic_0001>

<bundles_post_ra>
// kernel: tpu_custom_call.1
= control target key start
LH: loop header
LB: loop body
LE: loop exit
PB: predicated region body
PF: predicated region fallthrough
CT: control target
= control target key end

     0   :  { %6 = vsyncpa [#allocation3], 0  ;;  %s106_s0 = inlined_call_operand.hbm [shape: f32[8,128], index: 0, kind: input, shape index: {}]   ;;  %s107_s1 = inlined_call_operand.hbm [shape: f32[8,128], index: 1, kind: output, shape index: {}]  }
   0x1   :  { %7 = vsyncpa [#allocation4], 0  ;;  %s87_s6 = smov [#allocation2]  }
   0x2   :  { %s14_s7 = sshll.u32 %s87_s6, 4  ;;  %s15_s7 = int_to_ptr.vmem [resolvable:$true] %s14_s7 }
   0x3   :  { %s51_s8 = scalar_lea.vmem %s15_s7, 128  ;;  %p56_p1 = scmp.lt.s32.totalorder %s15_s7, %s15_s7 }
   0x4   :  { %p52_p0 = scmp.ne.s32.totalorder %s15_s7, %s51_s8  ;;  %p57_p2 = scmp.lt.s32.totalorder %s51_s8, %s51_s8 }
   0x6   :  { %p58_p3 = por %p57_p2, %p56_p1 }
   0x8   :  { %p59_p4 = pnand %p58_p3, %p52_p0 }
   0xa   :  { %62 = shalt.err (!%p59_p4)
}
   0xb   :  { %17 = dma.hbm_to_vmem [thread:$0]  %s106_s0, 128, %s15_s7, [#allocation3]  }
   0xc   :  { %83 = dma.done.wait [#allocation3], 128  }
   0xd   :  { %84 = vsyncadd [#allocation3], 4294967168  ;;  %v21_v0 = vld [vmem:[#allocation2] sm:$0xff]  ;;  %s88_s11 = smov 1   ;;  %s89_s12 = smov [#allocation5]  }
   0xe   :  { %22 = vrot.lane.b32.xlu0 %v21_v0, %s88_s11  ;;  %s31_s13 = sshll.u32 %s89_s12, 4  ;;  %s32_s13 = int_to_ptr.vmem [resolvable:$true] %s31_s13 }
   0xf   :  { %s63_s14 = scalar_lea.vmem %s32_s13, 128  ;;  %p68_p6 = scmp.lt.s32.totalorder %s32_s13, %s32_s13 }
  0x10   :  { %p64_p5 = scmp.ne.s32.totalorder %s32_s13, %s63_s14  ;;  %p69_p7 = scmp.lt.s32.totalorder %s63_s14, %s63_s14 }
  0x12   :  { %p70_p8 = por %p69_p7, %p68_p6 }
  0x14   :  { %p71_p9 = pnand %p70_p8, %p64_p5 }
  0x80   :  { %v23_v1 = vpop.permute.xlu0 %22 }
  0x81   :  { %24 = vst [vmem:[#allocation5] sm:$0xff] %v23_v1 }
  0x82   :  { %74 = shalt.err (!%p71_p9)
}
  0x83   :  { %34 = dma.vmem_to_hbm [thread:$0]  %s32_s13, 128, %s107_s1, [#allocation4]  }
  0x84   :  { %85 = dma.done.wait [#allocation4], 128  }
  0x85   :  { %86 = vsyncadd [#allocation4], 4294967168 }
  0x86   :  { %38 = vsyncpa [#allocation3], 1 }
  0x87   :  { %39 = vsyncpa [#allocation4], 1 }

// kernel: tpu_custom_call.1
= control target key start
LH: loop header
LB: loop body
LE: loop exit
PB: predicated region body
PF: predicated region fallthrough
CT: control target
= control target key end

     0   :  { %6 = vsyncpa [#allocation3], 0  ;;  %s53_s6 = smov [#allocation2]   ;;  %s71_s0 = inlined_call_operand.hbm [shape: f32[8,128], index: 0, kind: input, shape index: {}]   ;;  %s72_s1 = inlined_call_operand.vmem [shape: s32[8,128], index: 1, kind: output, shape index: {}]  }
   0x1   :  { %s13_s7 = sshll.u32 %s53_s6, 4  ;;  %s14_s7 = int_to_ptr.vmem [resolvable:$true] %s13_s7 }
   0x2   :  { %s39_s8 = scalar_lea.vmem %s14_s7, 128  ;;  %p44_p1 = scmp.lt.s32.totalorder %s14_s7, %s14_s7 }
   0x3   :  { %p40_p0 = scmp.ne.s32.totalorder %s14_s7, %s39_s8  ;;  %p45_p2 = scmp.lt.s32.totalorder %s39_s8, %s39_s8 }
   0x5   :  { %p46_p3 = por %p45_p2, %p44_p1 }
   0x7   :  { %p47_p4 = pnand %p46_p3, %p40_p0 }
   0x9   :  { %50 = shalt.err (!%p47_p4)
}
   0xa   :  { %16 = dma.hbm_to_vmem [thread:$0]  %s71_s0, 128, %s14_s7, [#allocation3]  }
   0xb   :  { %51 = dma.done.wait [#allocation3], 128  }
   0xc   :  { %52 = vsyncadd [#allocation3], 4294967168  ;;  %v20_v0 = vld [vmem:[#allocation2] sm:$0xff]  ;;  %v54_v1 = vmov 0  }
   0xd   :  { %vm21_vm0 = vcmp.lt.f32.partialorder %v20_v0, 1.0 }
   0xe   :  { %v22_v2 = vsel %vm21_vm0, 1, %v54_v1 }
   0xf   :  { %23 = vst [vmem:[%s72_s1] sm:$0xff] %v22_v2 }
  0x10   :  { %28 = vsyncpa [#allocation3], 1 }

// kernel: _grad_generation_impl.1
= control target key start
LH: loop header
LB: loop body
LE: loop exit
PB: predicated region body
PF: predicated region fallthrough
CT: control target
= control target key end

     0   :  { %v19_v0 = vlaneseq  ;;  %v251_v1 = vmov 1983009808   ;;  %s252_s11 = smov 112   ;;  %s253_s12 = smov 16   ;;  %vm28_vm0 = vcmask 916480   ;;  %vm60_vm1 = vcmask 130048   ;;  %s305_s1 = inlined_call_operand.vmem [shape: f32[2,256], index: 1, kind: input, shape index: {}]   ;;  %s306_s0 = inlined_call_operand.vmem [shape: f32[4,256], index: 0, kind: input, shape index: {}]   ;;  %s307_s2 = inlined_call_operand.vmem [shape: s8[2,256], index: 2, kind: output, shape index: {}]  }
   0x1   :  { %v17_v2 = vunpack.c.l.s4 %v251_v1  ;;  %v13_v3 = vld [vmem:[%s305_s1] sm:$0xf]  ;;  %s255_s14 = smov 1   ;;  %vm147_vm2 = vcmask 1039360   ;;  %vm160_vm3 = vcmask 7168   ;;  %vm230_vm7 = vcmask 1040384  }
   0x2   :  { %v276_v4 = vshrl.u32 %v19_v0, 7  ;;  %v89_v6 = vmul.f32 10.0, %v13_v3  ;;  %v14_v15 = vld [vmem:[%s306_s0] sm:$0xff]  ;;  %s254_s0 = smov 127   ;;  %vm231_vm8 = vsmask.f32 256 }
   0x3   :  { %v18_v5 = vunpack.c.0.s8 %v17_v2  ;;  %vm233_vm10 = vcmask 1041409   ;;  %vm234_vm11 = vsmask.f32 1280  ;;  %vm232_vm14 = vmand %vm230_vm7, %vm231_vm8 }
   0x4   :  { %v37_v11 = vsub.s32 1, %v276_v4  ;;  %v41_v12 = vsub.s32 5, %v276_v4  ;;  %v67_v13 = vsub.s32 0, %v276_v4  ;;  %v71_v14 = vsub.s32 4, %v276_v4  ;;  %vm235_vm15 = vmand %vm233_vm10, %vm234_vm11 }
   0x5   :  { %v21_v7 = vsub.s32 %v18_v5, %v276_v4  ;;  %v125_v45 = vsub.s32 3, %v276_v4  ;;  %v129_v46 = vsub.s32 7, %v276_v4  ;;  %v107_v47 = vsub.s32 2, %v276_v4 }
   0x6   :  { %v38_v17 = vrot.slane %v14_v15, %v37_v11  ;;  %v42_v18 = vrot.slane %v14_v15, %v41_v12  ;;  %v68_v19 = vrot.slane %v14_v15, %v67_v13  ;;  %v72_v20 = vrot.slane %v14_v15, %v71_v14 }
   0x7   :  { %v22_v8 = vrot.slane %v13_v3, %v21_v7  ;;  %v97_v9 = vrot.slane %v89_v6, %v21_v7  ;;  %v111_v48 = vsub.s32 6, %v276_v4  ;;  %v126_v49 = vrot.slane %v14_v15, %v125_v45 }
   0x8   :  { %v48_v23 = vrot.slane %v38_v17, %v37_v11  ;;  %v52_v24 = vrot.slane %v42_v18, %v37_v11  ;;  %v78_v25 = vrot.slane %v68_v19, %v67_v13  ;;  %v82_v26 = vrot.slane %v72_v20, %v67_v13 }
   0x9   :  { %24 = vrot.lane.b32.xlu0 %v22_v8, %s252_s11  ;;  %v23_v10 = vcombine.high %v22_v8, %v22_v8  ;;  %v98_v42 = vcombine.high %v97_v9, %v97_v9  ;;  %v130_v50 = vrot.slane %v14_v15, %v129_v46  ;;  %v108_v51 = vrot.slane %v14_v15, %v107_v47 }
   0xa   :  { %v112_v52 = vrot.slane %v14_v15, %v111_v48  ;;  %v136_v55 = vrot.slane %v126_v49, %v125_v45 }
   0xb   :  { %55 = vrot.lane.b32.xlu1 %v23_v10, %s253_s12  ;;  %v140_v56 = vrot.slane %v130_v50, %v125_v45  ;;  %v118_v57 = vrot.slane %v108_v51, %v107_v47 }
   0xc   :  { %v122_v58 = vrot.slane %v112_v52, %v107_v47 }
   0xd   :  { %26 = vrot.lane.b32.xlu0 %v23_v10, %s252_s11 }
   0xf   :  { %58 = vrot.lane.b32.xlu1 %v22_v8, %s253_s12 }
  0x7b   :  { %v25_v16 = vpop.permute.xlu0 %24 }
  0x7d   :  { %v56_v21 = vpop.permute.xlu1 %55 }
  0x7f   :  { %v27_v22 = vpop.permute.xlu0 %26 }
  0x80   :  { %v29_v27 = vsel %vm28_vm0, %v25_v16, %v27_v22  ;;  %v33_v28 = vsel %vm28_vm0, %v27_v22, %v25_v16  ;;  %vm236_vm0 = vmor %vm235_vm15, %vm232_vm14 }
  0x81   :  { %v59_v29 = vpop.permute.xlu1 %58  ;;  %v53_v32 = vmul.f32 %v48_v23, %v29_v27  ;;  %v54_v33 = vmul.f32 %v52_v24, %v33_v28  ;;  %v256_v28 = vmov 1966171168  }
  0x82   :  { %v61_v30 = vsel %vm60_vm1, %v59_v29, %v56_v21  ;;  %v64_v31 = vsel %vm60_vm1, %v56_v21, %v59_v29  ;;  %v217_v29 = vunpack.c.l.s4 %v256_v28 }
  0x83   :  { %v83_v34 = vmul.f32 %v78_v25, %v64_v31  ;;  %v84_v35 = vmul.f32 %v82_v26, %v61_v30 }
  0x85   :  { %v85_v36 = vadd.f32 %v83_v34, %v53_v32  ;;  %v86_v37 = vadd.f32 %v84_v35, %v54_v33  ;;  %v104_v38 = vsub.f32 %v54_v33, %v84_v35  ;;  %v103_v39 = vsub.f32 %v53_v32, %v83_v34 }
  0x87   :  { %173 = vrot.lane.b32.xlu1 %v104_v38, %s254_s0  ;;  %171 = vrot.lane.b32.xlu0 %v103_v39, %s254_s0  ;;  %v87_v40 = vmul.f32 3.0, %v85_v36  ;;  %v88_v41 = vmul.f32 3.0, %v86_v37  ;;  %v198_v14 = vmul.f32 10.0, %v104_v38  ;;  %v197_v15 = vmul.f32 10.0, %v103_v39 }
  0x88   :  { %v218_v36 = vunpack.c.0.s8 %v217_v29  ;;  %v257_v37 = vmov 0  }
  0x89   :  { %v102_v43 = vadd.f32 %v98_v42, %v88_v41  ;;  %v101_v44 = vadd.f32 %v97_v9, %v87_v40 }
  0x8b   :  { %185 = vrot.lane.b32.xlu1 %v103_v39, %s255_s14  ;;  %182 = vrot.lane.b32.xlu0 %v104_v38, %s255_s14  ;;  %v221_v39 = vsub.s32 %v218_v36, %v276_v4 }
  0x8f   :  { %145 = vrot.lane.b32.xlu1 %v102_v43, %s254_s0  ;;  %143 = vrot.lane.b32.xlu0 %v101_v44, %s254_s0 }
  0x93   :  { %158 = vrot.lane.b32.xlu1 %v101_v44, %s255_s14  ;;  %155 = vrot.lane.b32.xlu0 %v102_v43, %s255_s14  ;;  %v237_v43 = vld [vmem:[%s307_s2] sm:$0x3] }
  0xf9   :  { %v174_v53 = vpop.permute.xlu1 %173  ;;  %v172_v54 = vpop.permute.xlu0 %171 }
  0xfa   :  { %v175_v59 = vsel %vm147_vm2, %v172_v54, %v174_v53  ;;  %v179_v60 = vsel %vm147_vm2, %v174_v53, %v172_v54 }
  0xfb   :  { %v180_v1 = vmul.f32 %v175_v59, %v136_v55  ;;  %v181_v2 = vmul.f32 %v179_v60, %v140_v56 }
  0xfd   :  { %v186_v61 = vpop.permute.xlu1 %185  ;;  %v183_v62 = vpop.permute.xlu0 %182 }
  0xfe   :  { %v187_v63 = vsel %vm160_vm3, %v186_v61, %v183_v62  ;;  %v190_v0 = vsel %vm160_vm3, %v183_v62, %v186_v61 }
  0xff   :  { %v191_v3 = vmul.f32 %v190_v0, %v118_v57  ;;  %v192_v5 = vmul.f32 %v187_v63, %v122_v58 }
 0x101   :  { %v193_v6 = vadd.f32 %v191_v3, %v180_v1  ;;  %v194_v7 = vadd.f32 %v192_v5, %v181_v2  ;;  %v146_v8 = vpop.permute.xlu1 %145  ;;  %v144_v9 = vpop.permute.xlu0 %143 }
 0x102   :  { %v148_v12 = vsel %vm147_vm2, %v144_v9, %v146_v8  ;;  %v152_v13 = vsel %vm147_vm2, %v146_v8, %v144_v9 }
 0x103   :  { %v195_v10 = vmul.f32 3.0, %v193_v6  ;;  %v196_v11 = vmul.f32 3.0, %v194_v7  ;;  %v153_v18 = vmul.f32 %v148_v12, %v136_v55  ;;  %v154_v19 = vmul.f32 %v152_v13, %v140_v56 }
 0x105   :  { %v159_v16 = vpop.permute.xlu1 %158  ;;  %v156_v17 = vpop.permute.xlu0 %155  ;;  %v199_v22 = vadd.f32 %v197_v15, %v195_v10  ;;  %v200_v23 = vadd.f32 %v198_v14, %v196_v11 }
 0x106   :  { %v161_v20 = vsel %vm160_vm3, %v159_v16, %v156_v17  ;;  %v164_v21 = vsel %vm160_vm3, %v156_v17, %v159_v16 }
 0x107   :  { %v165_v24 = vmul.f32 %v164_v21, %v118_v57  ;;  %v166_v25 = vmul.f32 %v161_v20, %v122_v58  ;;  %v203_v30 = vmul.f32 %v199_v22, %v199_v22  ;;  %v204_v31 = vmul.f32 %v200_v23, %v200_v23 }
 0x109   :  { %v167_v26 = vsub.f32 %v153_v18, %v165_v24  ;;  %v168_v27 = vsub.f32 %v154_v19, %v166_v25 }
 0x10b   :  { %v201_v32 = vmul.f32 %v167_v26, %v167_v26  ;;  %v202_v33 = vmul.f32 %v168_v27, %v168_v27 }
 0x10d   :  { %v205_v34 = vadd.f32 %v203_v30, %v201_v32  ;;  %v206_v35 = vadd.f32 %v204_v31, %v202_v33 }
 0x10f   :  { %vm207_vm4 = vcmp.lt.f32.partialorder %v205_v34, 1.0  ;;  %vm208_vm5 = vcmp.lt.f32.partialorder %v206_v35, 1.0 }
 0x110   :  { %vm209_vm6 = vmpackc.low %vm207_vm4, %vm207_vm4 }
 0x111   :  { %vm210_vm9 = vmpackc.even %vm209_vm6, %vm209_vm6 }
 0x112   :  { %vm211_vm12 = vmpackc.low %vm208_vm5, %vm208_vm5  ;;  %v213_v38 = vsel %vm210_vm9, 16843009, %v257_v37 }
 0x113   :  { %vm212_vm13 = vmpackc.even %vm211_vm12, %vm211_vm12 }
 0x114   :  { %v214_v40 = vsel %vm212_vm13, 16843009, %v257_v37 }
 0x115   :  { %v215_v41 = vcombine.low %v213_v38, %v214_v40 }
 0x117   :  { %v222_v42 = vrot.slane %v215_v41, %v221_v39 }
 0x119   :  { %v229_v44 = vrot.slane %v222_v42, %v221_v39 }
 0x11b   :  { %v238_v45 = vsel %vm236_vm0, %v229_v44, %v237_v43 }
 0x11c   :  { %239 = vst [vmem:[%s307_s2] sm:$0x3] %v238_v45 }

</bundles_post_ra>
